<compile_context>
chip_gen: v7x
topology: tpu7x:2x2x1
jax: 0.10.0
libtpu: 0.0.40
codegen_flags: <defaults>
</compile_context>

<pallas_src>
import jax
import jax.numpy as jnp
from jax import lax
from jax.experimental import pallas as pl
from jax.experimental.pallas import tpu as pltpu


def _mlp_kernel(xu_ref, xi_ref, xs_ref, w1u_ref, w1i_ref, w1s_ref,
                b1_ref, w2_ref, b2_ref, o_ref):
    # xu/xi/xs : (tile_n, edim) activation tiles, streamed in their HBM dtype
    # w1u/w1i/w1s : (edim, edim) bf16 weight slabs (resident across the grid)
    # b1 : (1, edim) f32, w2 : (1, edim) f32 row vector, b2 : (1, 1) f32
    # o  : (tile_n, 1) f32 logits tile
    cd = w1u_ref.dtype
    xu = xu_ref[...].astype(cd)          # in-kernel cast: no extra HBM round trip
    xi = xi_ref[...].astype(cd)
    xs = xs_ref[...].astype(cd)

    # Layer 1: three small MXU matmuls, accumulated in f32.
    acc = jnp.dot(xu, w1u_ref[...], preferred_element_type=jnp.float32)
    acc = acc + jnp.dot(xi, w1i_ref[...], preferred_element_type=jnp.float32)
    acc = acc + jnp.dot(xs, w1s_ref[...], preferred_element_type=jnp.float32)

    h = jnp.maximum(acc + b1_ref[...], 0.0)          # bias + ReLU, f32 on VPU

    # TODO(synk): Dropout is identity in eval mode; training-mode stochastic
    # masking (pltpu.prng_seed / prng_random_bits) is intentionally not emitted.

    # Layer 2 (edim -> 1): VPU multiply + lane reduction instead of a width-1
    # MXU matmul (which would waste 127/128 of the MXU output columns).
    logits = jnp.sum(h * w2_ref[...], axis=-1, keepdims=True) + b2_ref[...]
    o_ref[...] = logits.astype(o_ref.dtype)


def _round_up(x, m):
    return ((x + m - 1) // m) * m


def _vmem_limit_bytes():
    """Per-generation VMEM limit: ~3/4 of physical, capped at 100 MiB."""
    cap = 64 * 1024 * 1024                      # conservative default: v7x per-TC
    try:
        info = pltpu.get_tpu_info()
        cap = int(getattr(info, "vmem_capacity_bytes", cap)) or cap
    except Exception:
        pass
    return min((cap * 3) // 4, 100 * 1024 * 1024)   # ~48 MiB v7x, ~96 MiB v5e/v6e


def _pick_tile_n(n, edim, in_itemsize, vmem_limit_bytes, max_tile_n=4096):
    """Batch tile: multiple of 8, (8,128)-padding-aware VMEM fit, >=2 grid steps."""
    edim_l = _round_up(edim, 128)               # lane padding
    # Per batch-row VMEM:
    #   3 streamed input tiles, 2 pipeline buffers each (lane-padded)
    #   (tile_n, 1) f32 output block -> padded to 128 lanes, 2 buffers
    #   f32 accumulator + elementwise temporaries
    per_row = (3 * edim_l * in_itemsize * 2
               + 128 * 4 * 2
               + 2 * edim_l * 4)
    # Grid-resident operands (W1 slabs bf16, b1/w2/b2 f32), double-buffered.
    resident = 2 * (3 * _round_up(edim, 8) * edim_l * 2 + 3 * edim_l * 4 + 128 * 4)
    budget = (vmem_limit_bytes * 3) // 4 - resident
    tile = max(budget // per_row, 8)
    tile = min(tile, max_tile_n)
    tile = (tile // 8) * 8
    # Guarantee >= 2 grid steps when there is enough work so the batch axis
    # can be split across v7x's 2 TensorCores (cheap on v5e/v6e).
    if n > 16:
        tile = min(tile, _round_up(pl.cdiv(n, 2), 8))
    if tile >= n:
        return n                                # single full-extent block
    return max(tile, 8)


def prepare_params(params, *, compute_dtype=jnp.bfloat16):
    """One-time parameter prep: split/cast W1, reshape b1/w2/b2 (not per call)."""
    w1 = jnp.asarray(params["w1"])              # (3*edim, edim), (in, out) layout
    edim = w1.shape[1]
    assert w1.shape[0] == 3 * edim, w1.shape
    return {
        "edim": edim,
        "w1u": w1[:edim].astype(compute_dtype),
        "w1i": w1[edim:2 * edim].astype(compute_dtype),
        "w1s": w1[2 * edim:].astype(compute_dtype),
        "b1": jnp.asarray(params["b1"]).reshape(1, edim).astype(jnp.float32),
        "w2": jnp.asarray(params["w2"]).reshape(1, edim).astype(jnp.float32),
        "b2": jnp.asarray(params["b2"]).reshape(1, 1).astype(jnp.float32),
    }


def exposure_predictor_forward(h_user, h_item, h_strategy, prepared, *, tile_n=None):
    """ExposurePredictor MLP forward inside a single Pallas kernel.

    h_user / h_item / h_strategy: (N, edim) arrays (f32 or bf16 - streamed as-is).
    prepared: output of prepare_params().
    Returns logits of shape (N,) (scalar for N == 1, matching torch .squeeze()).
    """
    n, edim = h_user.shape
    assert h_item.shape == (n, edim) and h_strategy.shape == (n, edim)
    assert prepared["edim"] == edim

    w1u, w1i, w1s = prepared["w1u"], prepared["w1i"], prepared["w1s"]
    b1, w2, b2 = prepared["b1"], prepared["w2"], prepared["b2"]

    in_itemsize = jnp.dtype(h_user.dtype).itemsize
    vmem_limit = _vmem_limit_bytes()
    if tile_n is None:
        tile_n = _pick_tile_n(n, edim, in_itemsize, vmem_limit)
    else:
        tile_n = min(int(tile_n), n)
        if tile_n < n:
            tile_n = max(8, (tile_n // 8) * 8)
    num_tiles = pl.cdiv(n, tile_n)

    row_spec = pl.BlockSpec((tile_n, edim), lambda i: (i, 0))
    w_spec = pl.BlockSpec((edim, edim), lambda i: (0, 0))
    vec_spec = pl.BlockSpec((1, edim), lambda i: (0, 0))

    w_itemsize = jnp.dtype(w1u.dtype).itemsize
    flops = 2 * n * (3 * edim) * edim + 4 * n * edim
    bytes_accessed = (3 * n * edim * in_itemsize          # activations
                      + 3 * edim * edim * w_itemsize      # W1 slabs
                      + (2 * edim + 1) * 4                # b1, w2, b2
                      + n * 4)                            # logits out

    out = pl.pallas_call(
        _mlp_kernel,
        out_shape=jax.ShapeDtypeStruct((n, 1), jnp.float32),
        grid_spec=pltpu.PrefetchScalarGridSpec(
            num_scalar_prefetch=0,
            grid=(num_tiles,),
            in_specs=[
                row_spec, row_spec, row_spec,             # xu, xi, xs tiles
                w_spec, w_spec, w_spec,                   # W1 slabs (resident)
                vec_spec,                                 # b1
                vec_spec,                                 # w2 row
                pl.BlockSpec((1, 1), lambda i: (0, 0)),   # b2
            ],
            out_specs=pl.BlockSpec((tile_n, 1), lambda i: (i, 0)),
        ),
        compiler_params=pltpu.CompilerParams(
            dimension_semantics=("parallel",),
            vmem_limit_bytes=vmem_limit),
        cost_estimate=pl.CostEstimate(flops=flops, transcendentals=0,
                                      bytes_accessed=bytes_accessed),
    )(h_user, h_item, h_strategy, w1u, w1i, w1s, b1, w2, b2)

    return jnp.squeeze(out)   # (N,) - matches torch .squeeze()


def init_params(key, edim):
    """Deterministic init mirroring nn.Linear's uniform(-1/sqrt(fan_in), +...)."""
    k1, k2, k3, k4 = jax.random.split(key, 4)
    in1 = 3 * edim
    lim1 = 1.0 / jnp.sqrt(in1)
    lim2 = 1.0 / jnp.sqrt(edim)
    return {
        # stored pre-transposed: (in_features, out_features)
        "w1": jax.random.uniform(k1, (in1, edim), jnp.float32, -lim1, lim1),
        "b1": jax.random.uniform(k2, (edim,), jnp.float32, -lim1, lim1),
        "w2": jax.random.uniform(k3, (edim, 1), jnp.float32, -lim2, lim2),
        "b2": jax.random.uniform(k4, (1,), jnp.float32, -lim2, lim2),
    }


if __name__ == "__main__":
    key = jax.random.PRNGKey(0)
    edim = 32
    params = init_params(jax.random.fold_in(key, 999), edim)
    prepared = prepare_params(params)

    # Reference uses the same bf16 rounding of activations/weights the kernel
    # applies (in-kernel), accumulated in f32 at highest precision.
    hp = lax.Precision.HIGHEST
    w1_q = params["w1"].astype(jnp.bfloat16).astype(jnp.float32)

    def reference(hu, hi, hs):
        xu = hu.astype(jnp.bfloat16).astype(jnp.float32)
        xi = hi.astype(jnp.bfloat16).astype(jnp.float32)
        xs = hs.astype(jnp.bfloat16).astype(jnp.float32)
        h = (jnp.dot(xu, w1_q[:edim], precision=hp)
             + jnp.dot(xi, w1_q[edim:2 * edim], precision=hp)
             + jnp.dot(xs, w1_q[2 * edim:], precision=hp)
             + params["b1"])
        h = jnp.maximum(h, 0.0)
        return jnp.squeeze(jnp.dot(h, params["w2"], precision=hp) + params["b2"])

    # 64: two full tiles (exercises >=2-step / v7x path);
    # 37: ragged last tile (clipped block); 2: tiny single full-extent block.
    for batch in (64, 37, 2):
        kb = jax.random.fold_in(key, batch)
        ku, ki, ks = jax.random.split(kb, 3)
        h_user = jax.random.normal(ku, (batch, edim), jnp.float32)
        h_item = jax.random.normal(ki, (batch, edim), jnp.float32)
        h_strategy = jax.random.normal(ks, (batch, edim), jnp.float32)

        logits = exposure_predictor_forward(h_user, h_item, h_strategy, prepared)
        jax.block_until_ready(logits)

        ref = reference(h_user, h_item, h_strategy)
        assert logits.shape == (batch,), logits.shape
        err = float(jnp.max(jnp.abs(logits - ref)))
        assert jnp.allclose(logits, ref, atol=2e-3, rtol=2e-3), (batch, err)

    print("KERNEL_OK")
</pallas_src>

<mosaic_0001>
module attributes {stable_mosaic.version = 11 : i64} {
  func.func @_mlp_kernel(%arg0: i32, %arg1: memref<32x32xf32, #tpu.memory_space<vmem>>, %arg2: memref<32x32xf32, #tpu.memory_space<vmem>>, %arg3: memref<32x32xf32, #tpu.memory_space<vmem>>, %arg4: memref<32x32xbf16, #tpu.memory_space<vmem>>, %arg5: memref<32x32xbf16, #tpu.memory_space<vmem>>, %arg6: memref<32x32xbf16, #tpu.memory_space<vmem>>, %arg7: memref<1x32xf32, #tpu.memory_space<vmem>>, %arg8: memref<1x32xf32, #tpu.memory_space<vmem>>, %arg9: memref<1x1xf32, #tpu.memory_space<vmem>>, %arg10: memref<32x1xf32, #tpu.memory_space<vmem>>) attributes {dimension_semantics = [#tpu.dimension_semantics<parallel>], iteration_bounds = array<i64: 2>, scalar_prefetch = 0 : i64, scratch_operands = 0 : i64, tpu.core_type = #tpu.core_type<tc>, window_params = [{transform_indices = @transform_0, window_bounds = array<i64: 32, 32>}, {transform_indices = @transform_1, window_bounds = array<i64: 32, 32>}, {transform_indices = @transform_2, window_bounds = array<i64: 32, 32>}, {pipeline_mode = #tpu.pipeline_mode<synchronous>, transform_indices = @transform_3, window_bounds = array<i64: 32, 32>}, {pipeline_mode = #tpu.pipeline_mode<synchronous>, transform_indices = @transform_4, window_bounds = array<i64: 32, 32>}, {pipeline_mode = #tpu.pipeline_mode<synchronous>, transform_indices = @transform_5, window_bounds = array<i64: 32, 32>}, {pipeline_mode = #tpu.pipeline_mode<synchronous>, transform_indices = @transform_6, window_bounds = array<i64: 1, 32>}, {pipeline_mode = #tpu.pipeline_mode<synchronous>, transform_indices = @transform_7, window_bounds = array<i64: 1, 32>}, {pipeline_mode = #tpu.pipeline_mode<synchronous>, transform_indices = @transform_8, window_bounds = array<i64: 1, 1>}, {transform_indices = @transform_9, window_bounds = array<i64: 32, 1>}]} {
    %c0 = arith.constant 0 : index
    %c0_0 = arith.constant 0 : index
    %0 = vector.load %arg1[%c0, %c0_0] : memref<32x32xf32, #tpu.memory_space<vmem>>, vector<32x32xf32>
    %1 = arith.truncf %0 : vector<32x32xf32> to vector<32x32xbf16>
    %c0_1 = arith.constant 0 : index
    %c0_2 = arith.constant 0 : index
    %2 = vector.load %arg2[%c0_1, %c0_2] : memref<32x32xf32, #tpu.memory_space<vmem>>, vector<32x32xf32>
    %3 = arith.truncf %2 : vector<32x32xf32> to vector<32x32xbf16>
    %c0_3 = arith.constant 0 : index
    %c0_4 = arith.constant 0 : index
    %4 = vector.load %arg3[%c0_3, %c0_4] : memref<32x32xf32, #tpu.memory_space<vmem>>, vector<32x32xf32>
    %5 = arith.truncf %4 : vector<32x32xf32> to vector<32x32xbf16>
    %c0_5 = arith.constant 0 : index
    %c0_6 = arith.constant 0 : index
    %6 = vector.load %arg4[%c0_5, %c0_6] : memref<32x32xbf16, #tpu.memory_space<vmem>>, vector<32x32xbf16>
    %cst = arith.constant dense<0.000000e+00> : vector<32x32xf32>
    %7 = tpu.matmul %1, %6, %cst {dimension_numbers = #tpu.dot_dimension_numbers<[1], [0], [0], [1], [0, 0, 1, 1], [], []>} : vector<32x32xbf16>, vector<32x32xbf16>, vector<32x32xf32> -> vector<32x32xf32>
    %c0_7 = arith.constant 0 : index
    %c0_8 = arith.constant 0 : index
    %8 = vector.load %arg5[%c0_7, %c0_8] : memref<32x32xbf16, #tpu.memory_space<vmem>>, vector<32x32xbf16>
    %cst_9 = arith.constant dense<0.000000e+00> : vector<32x32xf32>
    %9 = tpu.matmul %3, %8, %cst_9 {dimension_numbers = #tpu.dot_dimension_numbers<[1], [0], [0], [1], [0, 0, 1, 1], [], []>} : vector<32x32xbf16>, vector<32x32xbf16>, vector<32x32xf32> -> vector<32x32xf32>
    %10 = arith.addf %7, %9 : vector<32x32xf32>
    %c0_10 = arith.constant 0 : index
    %c0_11 = arith.constant 0 : index
    %11 = vector.load %arg6[%c0_10, %c0_11] : memref<32x32xbf16, #tpu.memory_space<vmem>>, vector<32x32xbf16>
    %cst_12 = arith.constant dense<0.000000e+00> : vector<32x32xf32>
    %12 = tpu.matmul %5, %11, %cst_12 {dimension_numbers = #tpu.dot_dimension_numbers<[1], [0], [0], [1], [0, 0, 1, 1], [], []>} : vector<32x32xbf16>, vector<32x32xbf16>, vector<32x32xf32> -> vector<32x32xf32>
    %13 = arith.addf %10, %12 : vector<32x32xf32>
    %c0_13 = arith.constant 0 : index
    %c0_14 = arith.constant 0 : index
    %14 = vector.load %arg7[%c0_13, %c0_14] : memref<1x32xf32, #tpu.memory_space<vmem>>, vector<1x32xf32>
    %15 = vector.broadcast %14 : vector<1x32xf32> to vector<32x32xf32>
    %16 = arith.addf %13, %15 : vector<32x32xf32>
    %cst_15 = arith.constant 0.000000e+00 : f32
    %17 = vector.broadcast %cst_15 : f32 to vector<32x32xf32>
    %18 = arith.maximumf %16, %17 : vector<32x32xf32>
    %c0_16 = arith.constant 0 : index
    %c0_17 = arith.constant 0 : index
    %19 = vector.load %arg8[%c0_16, %c0_17] : memref<1x32xf32, #tpu.memory_space<vmem>>, vector<1x32xf32>
    %20 = vector.broadcast %19 : vector<1x32xf32> to vector<32x32xf32>
    %21 = arith.mulf %18, %20 : vector<32x32xf32>
    %cst_18 = arith.constant dense<0.000000e+00> : vector<32xf32>
    %22 = vector.multi_reduction <add>, %21, %cst_18 [1] : vector<32x32xf32> to vector<32xf32>
    %23 = vector.shape_cast %22 : vector<32xf32> to vector<32x1xf32>
    %c0_19 = arith.constant 0 : index
    %c0_20 = arith.constant 0 : index
    %24 = vector.load %arg9[%c0_19, %c0_20] : memref<1x1xf32, #tpu.memory_space<vmem>>, vector<1x1xf32>
    %25 = vector.broadcast %24 : vector<1x1xf32> to vector<32x1xf32>
    %26 = arith.addf %23, %25 : vector<32x1xf32>
    %c0_21 = arith.constant 0 : index
    %c0_22 = arith.constant 0 : index
    %27 = vector.load %arg10[%c0_21, %c0_22] : memref<32x1xf32, #tpu.memory_space<vmem>>, vector<32x1xf32>
    tpu.vector_store %arg10[%c0_21, %c0_22], %26 {strides = array<i32>} : memref<32x1xf32, #tpu.memory_space<vmem>>, vector<32x1xf32>,
    return
  }
  func.func @transform_0(%arg0: i32) -> (i32, i32) {
    %c0_i32 = arith.constant 0 : i32
    %c0_i32_0 = arith.constant 0 : i32
    return %arg0, %c0_i32 : i32, i32
  }
  func.func @transform_1(%arg0: i32) -> (i32, i32) {
    %c0_i32 = arith.constant 0 : i32
    %c0_i32_0 = arith.constant 0 : i32
    return %arg0, %c0_i32 : i32, i32
  }
  func.func @transform_2(%arg0: i32) -> (i32, i32) {
    %c0_i32 = arith.constant 0 : i32
    %c0_i32_0 = arith.constant 0 : i32
    return %arg0, %c0_i32 : i32, i32
  }
  func.func @transform_3(%arg0: i32) -> (i32, i32) {
    %c0_i32 = arith.constant 0 : i32
    %c0_i32_0 = arith.constant 0 : i32
    %c0_i32_1 = arith.constant 0 : i32
    return %c0_i32, %c0_i32_0 : i32, i32
  }
  func.func @transform_4(%arg0: i32) -> (i32, i32) {
    %c0_i32 = arith.constant 0 : i32
    %c0_i32_0 = arith.constant 0 : i32
    %c0_i32_1 = arith.constant 0 : i32
    return %c0_i32, %c0_i32_0 : i32, i32
  }
  func.func @transform_5(%arg0: i32) -> (i32, i32) {
    %c0_i32 = arith.constant 0 : i32
    %c0_i32_0 = arith.constant 0 : i32
    %c0_i32_1 = arith.constant 0 : i32
    return %c0_i32, %c0_i32_0 : i32, i32
  }
  func.func @transform_6(%arg0: i32) -> (i32, i32) {
    %c0_i32 = arith.constant 0 : i32
    %c0_i32_0 = arith.constant 0 : i32
    %c0_i32_1 = arith.constant 0 : i32
    return %c0_i32, %c0_i32_0 : i32, i32
  }
  func.func @transform_7(%arg0: i32) -> (i32, i32) {
    %c0_i32 = arith.constant 0 : i32
    %c0_i32_0 = arith.constant 0 : i32
    %c0_i32_1 = arith.constant 0 : i32
    return %c0_i32, %c0_i32_0 : i32, i32
  }
  func.func @transform_8(%arg0: i32) -> (i32, i32) {
    %c0_i32 = arith.constant 0 : i32
    %c0_i32_0 = arith.constant 0 : i32
    %c0_i32_1 = arith.constant 0 : i32
    return %c0_i32, %c0_i32_0 : i32, i32
  }
  func.func @transform_9(%arg0: i32) -> (i32, i32) {
    %c0_i32 = arith.constant 0 : i32
    %c0_i32_0 = arith.constant 0 : i32
    return %arg0, %c0_i32 : i32, i32
  }
}

</mosaic_0001>

<bundles_post_ra>
// kernel: tpu_custom_call.1
= control target key start
LH: loop header
LB: loop body
LE: loop exit
PB: predicated region body
PF: predicated region fallthrough
CT: control target
= control target key end

     0   :  { %s902_s11 = smov 0   ;;  %s965_s0 = inlined_call_operand.vmem [shape: f32[64,32], index: 0, kind: input, shape index: {}]   ;;  %s966_s1 = inlined_call_operand.vmem [shape: f32[64,32], index: 1, kind: input, shape index: {}]   ;;  %s967_s2 = inlined_call_operand.vmem [shape: f32[64,32], index: 2, kind: input, shape index: {}]   ;;  %s968_s3 = inlined_call_operand.vmem [shape: bf16[32,32], index: 3, kind: input, shape index: {}]   ;;  %s969_s4 = inlined_call_operand.vmem [shape: bf16[32,32], index: 4, kind: input, shape index: {}]   ;;  %s970_s5 = inlined_call_operand.vmem [shape: bf16[32,32], index: 5, kind: input, shape index: {}]   ;;  %s971_s6 = inlined_call_operand.vmem [shape: f32[1,32], index: 6, kind: input, shape index: {}]   ;;  %s972_s7 = inlined_call_operand.vmem [shape: f32[1,32], index: 7, kind: input, shape index: {}]   ;;  %s973_s8 = inlined_call_operand.<no memory space> [shape: f32[1,1], index: 8, kind: input, shape index: {}]   ;;  %s974_s9 = inlined_call_operand.vmem [shape: f32[64,1], index: 9, kind: output, shape index: {}]  }
   0x1   :  { %v14_v0 = vstv %s973_s8 }
   0x2   :  { %15 = vst [vmem:[#allocation2] sm:$0x1] %v14_v0 }
   0x3 LB: > { %s753_s12 = sadd.s32 4294967295, %s847_s11   ;;  %p757_p0 = scmp.ge.s32.totalorder %s847_s11, 1  ;;  %s847_s11 = sphi %s902_s11, %s21_s11  }
   0x4   : > { %p312_p1 = scmp.lt.s32.totalorder %s847_s11, 3 }
   0x6   : > { %p313_p2 = pnand %p757_p0, %p312_p1 }
   0x7   : > { %v835_v1 = vld [vmem:[%s968_s3] sm:$0xff] (!%p313_p2)   ;;  %s758_s8 = sshll.u32 (!%p313_p2), %s753_s12, 2  ;;  %v836_v2 = vld [vmem:[%s968_s3 + $0x8] sm:$0xff] (!%p313_p2)   ;;  %vm421_vm0 = vcmask (!%p313_p2), 261120   ;;  %vm668_vm1 = vcmask (!%p313_p2), 7168  }
   0x8   : > { %316 = sbr.rel (%p313_p2) target bundleno = 405 (0x195), region = 56  ;;  %p359_p3 = scmp.lt.s32.totalorder (!%p313_p2), %s758_s8, 7  ;;  %803 = vmatprep.subr.bf16.mxu0 (!%p313_p2), %v835_v1  ;;  %v837_v3 = vld [vmem:[%s970_s5] sm:$0xff] (!%p313_p2)   ;;  %v839_v5 = vld [vmem:[%s969_s4 + $0x8] sm:$0xff] (!%p313_p2)  }
   0x9   : > { %804 = vmatpush3.bf16.msra.mxu0 (!%p313_p2), %v835_v1  ;;  %v838_v4 = vld [vmem:[%s969_s4] sm:$0xff] (!%p313_p2)   ;;  %v840_v9 = vld [vmem:[%s970_s5 + $0x8] sm:$0xff] (!%p313_p2)  }
   0xa   : > { %805 = vmatprep.subr.bf16.mxu0 (!%p313_p2), %v836_v2  ;;  %795 = vmatprep.subr.bf16.mxu1 (!%p313_p2), %v838_v4  ;;  %v778_v30 = vld [vmem:[%s971_s6] ss:$0 sm:$0xff] (!%p313_p2) }
   0xb   : > { %796 = vmatpush3.bf16.msra.mxu1 (!%p313_p2), %v838_v4  ;;  %v779_v40 = vld [vmem:[%s972_s7] ss:$0 sm:$0xff] (!%p313_p2) }
   0xc   : > { %797 = vmatprep.subr.bf16.mxu1 (!%p313_p2), %v839_v5  ;;  %v780_v55 = vld [vmem:[#allocation2] ss:$0 sm:$0xff] (!%p313_p2) }
   0xd   : > { %806 = vmatpush3.bf16.msra.mxu0 (!%p313_p2), %v836_v2 }
   0xe   : > { %811 = vmatprep.subr.bf16.mxu0 (!%p313_p2), %v837_v3 }
   0xf   : > { %s976_s8 = smov (!%p359_p3, %s758_s8), 7  ;;  %798 = vmatpush3.bf16.msra.mxu1 %v839_v5 }
  0x10   : > { %s925_s23 = sshll.u32 %s976_s8, 3 }
  0x11   : > { %s362_s26 = scalar_lea.vmem %s965_s0, %s925_s23  ;;  %s368_s29 = scalar_lea.vmem %s966_s1, %s925_s23 }
  0x12   : > { %v383_v6 = vld [vmem:[%s362_s26] sm:$0xff]  ;;  %v384_v7 = vld [vmem:[%s362_s26 + $0x8] sm:$0xff]  ;;  %v385_v8 = vld [vmem:[%s362_s26 + $0x10] sm:$0xff]  ;;  %s374_s14 = scalar_lea.vmem %s967_s2, %s925_s23  ;;  %s380_s20 = scalar_lea.vmem %s974_s9, %s925_s23 }
  0x13   : > { %v387_v10 = vpack.c.bf16 %v384_v7, %v383_v6  ;;  %v386_v11 = vld [vmem:[%s362_s26 + $0x18] sm:$0xff]  ;;  %v389_v12 = vld [vmem:[%s368_s29] sm:$0xff]  ;;  %v390_v13 = vld [vmem:[%s368_s29 + $0x8] sm:$0xff] }
  0x14   : > { %v388_v14 = vpack.c.bf16 %v386_v11, %v385_v8  ;;  %v393_v15 = vpack.c.bf16 %v390_v13, %v389_v12  ;;  %v391_v16 = vld [vmem:[%s368_s29 + $0x10] sm:$0xff]  ;;  %v392_v17 = vld [vmem:[%s368_s29 + $0x18] sm:$0xff]  ;;  %v395_v18 = vld [vmem:[%s374_s14] sm:$0xff] }
  0x15   : > { %807 = vmatprep.mubr.msk.bf16.mxu0 %vm421_vm0, %v387_v10  ;;  %v394_v19 = vpack.c.bf16 %v392_v17, %v391_v16  ;;  %v396_v20 = vld [vmem:[%s374_s14 + $0x8] sm:$0xff]  ;;  %v397_v22 = vld [vmem:[%s374_s14 + $0x10] sm:$0xff]  ;;  %v398_v23 = vld [vmem:[%s374_s14 + $0x18] sm:$0xff] }
  0x16   : > { %808 = vmatmul.mubr.msk.bf16.vlgmr.msra.gmra.mrb[0].mxu0 %vm421_vm0, %v388_v14  ;;  %799 = vmatprep.mubr.msk.bf16.mxu1 %vm421_vm0, %v393_v15  ;;  %v399_v21 = vpack.c.bf16 %v396_v20, %v395_v18  ;;  %v400_v24 = vpack.c.bf16 %v398_v23, %v397_v22 }
  0x17   : > { %812 = vmatpush3.bf16.msra.mxu0 %v837_v3  ;;  %800 = vmatmul.mubr.msk.bf16.vlgmr.msra.gmra.mrb[0].mxu1 %vm421_vm0, %v394_v19 }
  0x18   : > { %813 = vmatprep.subr.bf16.mxu0 %v840_v9  ;;  %815 = vmatprep.mubr.msk.bf16.mxu0 %vm421_vm0, %v399_v21 }
  0x1b   : > { %814 = vmatpush3.bf16.msra.mxu0 %v840_v9 }
  0x22   : > { %816 = vmatmul.mubr.msk.bf16.vlgmr.msra.gmra.mrb[0].mxu0 %vm421_vm0, %v400_v24 }
  0xea   : > { %v801_v25 = vpop.f32.mrb[0].mxu1 }
  0xeb   : > { %v462_v26 = vpop.f32.mrb[1].mxu1 }
  0xec   : > { %v802_v27 = vpop.f32.mrb[2].mxu1 }
  0xed   : > { %v465_v28 = vpop.f32.mrb[3].mxu1 }
  0xf5   : > { %v817_v29 = vpop.f32.mrb[0].mxu0 }
  0xf6   : > { %v819_v31 = vadd.f32 %v817_v29, %v801_v25  ;;  %v600_v32 = vpop.f32.mrb[1].mxu0 }
  0xf7   : > { %v820_v33 = vadd.f32 %v600_v32, %v462_v26  ;;  %v818_v34 = vpop.f32.mrb[2].mxu0 }
  0xf8   : > { %v628_v35 = vadd.f32 %v819_v31, %v778_v30  ;;  %v821_v36 = vadd.f32 %v818_v34, %v802_v27  ;;  %v603_v37 = vpop.f32.mrb[3].mxu0 }
  0xf9   : > { %v626_v38 = vadd.f32 %v820_v33, %v778_v30  ;;  %v822_v39 = vadd.f32 %v603_v37, %v465_v28 }
  0xfa   : > { %v632_v41 = vmax.f32 %v628_v35, 0.0  ;;  %v629_v42 = vadd.f32 %v821_v36, %v778_v30 }
  0xfb   : > { %v630_v43 = vmax.f32 %v626_v38, 0.0  ;;  %v627_v44 = vadd.f32 %v822_v39, %v778_v30 }
  0xfc   : > { %v633_v45 = vmax.f32 %v629_v42, 0.0  ;;  %v643_v46 = vmul.f32 %v779_v40, %v632_v41 }
  0xfd   : > { %v631_v47 = vmax.f32 %v627_v44, 0.0  ;;  %v641_v48 = vmul.f32 %v779_v40, %v630_v43 }
  0xfe   : > { %v651_v49 = vsel %vm421_vm0, %v643_v46, 0.0  ;;  %v644_v50 = vmul.f32 %v779_v40, %v633_v45 }
  0xff   : > { %652 = vadd.xlane.f32.xlu1 %v651_v49  ;;  %v645_v51 = vsel %vm421_vm0, %v641_v48, 0.0  ;;  %v642_v52 = vmul.f32 %v779_v40, %v631_v47 }
 0x100   : > { %646 = vadd.xlane.f32.xlu0 %v645_v51  ;;  %v654_v53 = vsel %vm421_vm0, %v644_v50, 0.0 }
 0x101   : > { %v648_v54 = vsel %vm421_vm0, %v642_v52, 0.0 }
 0x103   : > { %655 = vadd.xlane.f32.xlu1 %v654_v53 }
 0x104   : > { %649 = vadd.xlane.f32.xlu0 %v648_v54 }
 0x18c   : > { %v653_v56 = vpop.xlane.xlu1 %652 }
 0x18d   : > { %v647_v57 = vpop.xlane.xlu0 %646  ;;  %v666_v62 = vadd.f32 %v780_v55, %v653_v56 }
 0x18e   : > { %v664_v58 = vadd.f32 %v780_v55, %v647_v57 }
 0x18f   : > { %671 = vst.msk [vmem:[%s380_s20 + $0x10] sm:$0xff] %vm668_vm1, %v666_v62 }
 0x190   : > { %669 = vst.msk [vmem:[%s380_s20] sm:$0xff] %vm668_vm1, %v664_v58  ;;  %v656_v59 = vpop.xlane.xlu1 %655 }
 0x191   : > { %v650_v60 = vpop.xlane.xlu0 %649  ;;  %v667_v63 = vadd.f32 %v780_v55, %v656_v59 }
 0x192   : > { %v665_v61 = vadd.f32 %v780_v55, %v650_v60 }
 0x193   : > { %672 = vst.msk [vmem:[%s380_s20 + $0x18] sm:$0xff] %vm668_vm1, %v667_v63 }
 0x194   : > { %670 = vst.msk [vmem:[%s380_s20 + $0x8] sm:$0xff] %vm668_vm1, %v665_v61 }
 0x195 PF: > { %s21_s11 = sadd.s32 1, %s847_s11  }
 0x196   : > { %p18_p4 = scmp.ge.s32.totalorder %s21_s11, 4  }
 0x198   :  { %20 = sbr.rel (!%p18_p4) target bundleno = 3 (0x3), region = 92 }

</bundles_post_ra>
